<compile_context>
chip_gen: v6e
topology: v6e:2x2x1
jax: 0.10.0
libtpu: 0.0.40
codegen_flags: <defaults>
</compile_context>

<pallas_src>
import jax
import jax.numpy as jnp
from jax.experimental import pallas as pl
from jax.experimental.pallas import tpu as pltpu


def _round_up(x, m):
    return ((x + m - 1) // m) * m


def _leaky_relu(v, slope=0.2):
    return jnp.where(v >= 0, v, slope * v)


# ---------------------------------------------------------------------------
# Kernels
# ---------------------------------------------------------------------------
def _dec_kernel_resident(feat_ref, w1_ref, b1_ref, w2_ref, b2_ref, w3_ref,
                         b3_ref, out_ref):
    """All three (pre-transposed, lane-padded, bf16) weights resident in VMEM.
    One batch tile per grid step: 3 chained MXU matmuls (f32 accumulation)
    with LeakyReLU(0.2) after the first two."""
    x = feat_ref[...].astype(jnp.bfloat16)                      # in-kernel cast (VPU)
    h = jnp.dot(x, w1_ref[...], preferred_element_type=jnp.float32) + b1_ref[...]
    h = _leaky_relu(h).astype(jnp.bfloat16)
    h = jnp.dot(h, w2_ref[...], preferred_element_type=jnp.float32) + b2_ref[...]
    h = _leaky_relu(h).astype(jnp.bfloat16)
    h = jnp.dot(h, w3_ref[...], preferred_element_type=jnp.float32) + b3_ref[...]
    out_ref[...] = h.astype(out_ref.dtype)


def _dec_kernel_ktiled(feat_ref, w1_ref, b1_ref, w2_ref, b2_ref, w3_ref,
                       b3_ref, out_ref, acc_ref):
    """Fallback for large ngh: grid axis 1 tiles the hidden (ngh) dimension.
    Per k step: compute the k-th column tile of h1 = lrelu(fc1(x)) and add its
    contribution h1_k @ W2[k_tile, :] into an f32 VMEM accumulator; on the
    last k step add b2, apply LeakyReLU, and run fc3 (w3 stays resident)."""
    k = pl.program_id(1)

    @pl.when(k == 0)
    def _():
        acc_ref[...] = jnp.zeros_like(acc_ref)

    x = feat_ref[...].astype(jnp.bfloat16)                      # (TM, res_p)
    h1 = jnp.dot(x, w1_ref[...], preferred_element_type=jnp.float32) + b1_ref[...]
    h1 = _leaky_relu(h1).astype(jnp.bfloat16)                   # (TM, TK)
    acc_ref[...] += jnp.dot(h1, w2_ref[...], preferred_element_type=jnp.float32)

    @pl.when(k == pl.num_programs(1) - 1)
    def _():
        h2 = _leaky_relu(acc_ref[...] + b2_ref[...]).astype(jnp.bfloat16)
        h3 = jnp.dot(h2, w3_ref[...], preferred_element_type=jnp.float32) + b3_ref[...]
        out_ref[...] = h3.astype(out_ref.dtype)


# ---------------------------------------------------------------------------
# Parameter preparation (one-time, hoisted out of the hot path)
# ---------------------------------------------------------------------------
def prepare_dec_params(params, compute_dtype=jnp.bfloat16):
    """Convert PyTorch-convention params (W: (out, in), b: (out,)) into
    kernel-ready tensors: transposed to (in, out), zero-padded so every lane
    dim is a multiple of 128, weights cast to bf16, biases kept f32 (1, out)."""
    ngh, res_size = params["w1"].shape
    att_size = params["w3"].shape[0]
    res_p = _round_up(res_size, 128)
    ngh_p = _round_up(ngh, 128)
    att_p = _round_up(att_size, 128)

    def pad_w(w_t, rows, cols):  # w_t already (in, out)
        return jnp.pad(w_t, ((0, rows - w_t.shape[0]), (0, cols - w_t.shape[1])))

    def pad_b(b, cols):
        return jnp.pad(b, (0, cols - b.shape[0]))[None, :].astype(jnp.float32)

    return {
        "w1": pad_w(params["w1"].T, res_p, ngh_p).astype(compute_dtype),
        "b1": pad_b(params["b1"], ngh_p),
        "w2": pad_w(params["w2"].T, ngh_p, ngh_p).astype(compute_dtype),
        "b2": pad_b(params["b2"], ngh_p),
        "w3": pad_w(params["w3"].T, ngh_p, att_p).astype(compute_dtype),
        "b3": pad_b(params["b3"], att_p),
        "att_size": att_size,
        "res_size": res_size,
    }


# ---------------------------------------------------------------------------
# Tiling / budgeting helpers
# ---------------------------------------------------------------------------
_VMEM_HEADROOM = 8 << 20  # compiler-scratch headroom below physical VMEM


def _vmem_capacity_bytes():
    try:
        cap = int(pltpu.get_tpu_info().vmem_capacity_bytes)
        if cap > 0:
            return cap
    except Exception:
        pass
    return 64 << 20  # conservative default (v7x per-TC VMEM)


def _choose_tm(batch):
    """Batch tile: multiple of 16 (bf16 sublane packing), <= 512 rows.
    Keeps >= 2 grid steps when the batch allows it (v7x has 2 TensorCores and
    the batch axis is 'parallel'), while minimizing batch-padding waste."""
    b16 = _round_up(max(batch, 1), 16)
    if b16 < 32:
        return b16, b16                          # single tiny tile
    if b16 <= 1024:
        tm = min(512, _round_up((b16 + 1) // 2, 16))   # ~2 tiles, <=16 rows waste
        return tm, _round_up(b16, tm)
    best_tm, best_pad = 512, _round_up(b16, 512)
    for tm in (256, 128):
        bpad = _round_up(b16, tm)
        if bpad < best_pad:
            best_tm, best_pad = tm, bpad
    return best_tm, best_pad


def _choose_tk(ngh_p):
    for tk in (512, 256, 128):
        if ngh_p % tk == 0:
            return tk
    return ngh_p  # ngh_p is always a multiple of 128, so unreachable


# ---------------------------------------------------------------------------
# Forward wrapper
# ---------------------------------------------------------------------------
def dec_forward(feat, prepared, *, out_dtype=None, k_tile=None,
                force_k_tiled=False):
    """feat: (B, resSize) float32.  prepared: output of prepare_dec_params."""
    # TODO(synk): for repeated tiny-batch inference, keep weights VMEM-resident
    # across calls (cross-pallas_call prefetch, pattern P10) instead of
    # re-DMAing them every call.
    w1, b1 = prepared["w1"], prepared["b1"]
    w2, b2 = prepared["w2"], prepared["b2"]
    w3, b3 = prepared["w3"], prepared["b3"]
    att_size = prepared["att_size"]

    res_p, ngh_p = w1.shape
    att_p = w3.shape[1]
    B, res_size = feat.shape
    out_dtype = feat.dtype if out_dtype is None else out_dtype
    out_bytes = jnp.dtype(out_dtype).itemsize

    TM, B_pad = _choose_tm(B)

    vmem_cap = _vmem_capacity_bytes() - _VMEM_HEADROOM
    wbytes = (w1.size + w2.size + w3.size) * w1.dtype.itemsize
    bbytes = (b1.size + b2.size + b3.size) * 4

    # Resident-weight budget: single-buffered weights/biases, double-buffered
    # f32 feat tiles and out tiles, bf16/f32 intermediates, plus slack.
    resident_budget = (
        wbytes + bbytes
        + 2 * TM * res_p * 4
        + 2 * TM * att_p * out_bytes
        + 4 * TM * ngh_p * 4
        + (4 << 20)
    )
    use_ktiled = force_k_tiled or resident_budget > int(0.9 * vmem_cap)

    if use_ktiled:
        # Shrink the batch tile if the f32 accumulator alone would dominate.
        while TM > 16 and TM * ngh_p * 4 > vmem_cap // 3:
            TM = max(16, _round_up(TM // 2, 16))
        B_pad = _round_up(B, TM)
    n_bt = B_pad // TM

    # feat stays f32 (cast to bf16 inside the kernel); pad only if needed.
    x = feat
    if (B_pad, res_p) != (B, res_size):
        x = jnp.pad(x, ((0, B_pad - B), (0, res_p - res_size)))

    # Advisory cost estimate for XLA scheduling around the custom call.
    flops = 2 * B_pad * (res_p * ngh_p + ngh_p * ngh_p + ngh_p * att_p)
    bytes_accessed = B_pad * res_p * 4 + wbytes + bbytes + B_pad * att_p * out_bytes
    cost = pl.CostEstimate(flops=flops, transcendentals=0,
                           bytes_accessed=bytes_accessed)

    if not use_ktiled:
        const = lambda i: (0, 0)  # weights/biases: same block every batch tile
        vmem_bytes = int(min(max(resident_budget, 16 << 20), vmem_cap))
        out_pad = pl.pallas_call(
            _dec_kernel_resident,
            out_shape=jax.ShapeDtypeStruct((B_pad, att_p), out_dtype),
            grid_spec=pltpu.PrefetchScalarGridSpec(
                num_scalar_prefetch=0,
                grid=(n_bt,),
                in_specs=[
                    pl.BlockSpec((TM, res_p), lambda i: (i, 0)),      # feat tile (f32)
                    pl.BlockSpec((res_p, ngh_p), const, pipeline_mode=pl.Buffered(1)),
                    pl.BlockSpec((1, ngh_p), const, pipeline_mode=pl.Buffered(1)),
                    pl.BlockSpec((ngh_p, ngh_p), const, pipeline_mode=pl.Buffered(1)),
                    pl.BlockSpec((1, ngh_p), const, pipeline_mode=pl.Buffered(1)),
                    pl.BlockSpec((ngh_p, att_p), const, pipeline_mode=pl.Buffered(1)),
                    pl.BlockSpec((1, att_p), const, pipeline_mode=pl.Buffered(1)),
                ],
                out_specs=pl.BlockSpec((TM, att_p), lambda i: (i, 0)),
            ),
            compiler_params=pltpu.CompilerParams(
                dimension_semantics=("parallel",),
                vmem_limit_bytes=vmem_bytes,
            ),
            cost_estimate=cost,
        )(x, w1, b1, w2, b2, w3, b3)
    else:
        TK = _choose_tk(ngh_p) if k_tile is None else int(k_tile)
        assert ngh_p % TK == 0 and TK % 128 == 0, "k_tile must divide padded ngh"
        n_kt = ngh_p // TK
        # TODO(synk): for extreme ngh (accumulator TM*ngh_p*4 near the VMEM cap)
        # also tile the fc2-output / fc3-contraction dimension.
        ktiled_budget = (
            2 * TM * res_p * 4                       # feat tile (f32, double-buffered)
            + 2 * res_p * TK * 2 + 2 * TK * 4        # w1 / b1 column tiles
            + 2 * TK * ngh_p * 2                     # w2 row tile (double-buffered)
            + ngh_p * att_p * 2 + (ngh_p + att_p) * 4  # resident w3 / b2 / b3
            + TM * ngh_p * 4                         # f32 accumulator scratch
            + 2 * TM * att_p * out_bytes             # out tiles
            + 3 * TM * max(TK, att_p) * 4            # intermediates
            + (4 << 20)
        )
        vmem_bytes = int(min(max(ktiled_budget, 16 << 20), vmem_cap))
        const2 = lambda i, k: (0, 0)
        out_pad = pl.pallas_call(
            _dec_kernel_ktiled,
            out_shape=jax.ShapeDtypeStruct((B_pad, att_p), out_dtype),
            grid_spec=pltpu.PrefetchScalarGridSpec(
                num_scalar_prefetch=0,
                grid=(n_bt, n_kt),
                in_specs=[
                    pl.BlockSpec((TM, res_p), lambda i, k: (i, 0)),   # feat (resident over k)
                    pl.BlockSpec((res_p, TK), lambda i, k: (0, k)),   # w1 column tile
                    pl.BlockSpec((1, TK), lambda i, k: (0, k)),       # b1 tile
                    pl.BlockSpec((TK, ngh_p), lambda i, k: (k, 0)),   # w2 row tile
                    pl.BlockSpec((1, ngh_p), const2, pipeline_mode=pl.Buffered(1)),
                    pl.BlockSpec((ngh_p, att_p), const2, pipeline_mode=pl.Buffered(1)),
                    pl.BlockSpec((1, att_p), const2, pipeline_mode=pl.Buffered(1)),
                ],
                out_specs=pl.BlockSpec((TM, att_p), lambda i, k: (i, 0)),
                scratch_shapes=[pltpu.VMEM((TM, ngh_p), jnp.float32)],
            ),
            compiler_params=pltpu.CompilerParams(
                dimension_semantics=("parallel", "arbitrary"),
                vmem_limit_bytes=vmem_bytes,
            ),
            cost_estimate=cost,
        )(x, w1, b1, w2, b2, w3, b3)

    if (B_pad, att_p) == (B, att_size):
        return out_pad                       # no padding -> no slice copy
    return out_pad[:B, :att_size]


def init_dec_params(key, res_size, ngh, att_size):
    """Deterministic init matching weights_init: Linear W ~ N(0, 0.02), b = 0."""
    k1, k2, k3 = jax.random.split(key, 3)
    return {
        "w1": 0.02 * jax.random.normal(k1, (ngh, res_size), jnp.float32),
        "b1": jnp.zeros((ngh,), jnp.float32),
        "w2": 0.02 * jax.random.normal(k2, (ngh, ngh), jnp.float32),
        "b2": jnp.zeros((ngh,), jnp.float32),
        "w3": 0.02 * jax.random.normal(k3, (att_size, ngh), jnp.float32),
        "b3": jnp.zeros((att_size,), jnp.float32),
    }


if __name__ == "__main__":
    def lrelu(v):
        return jnp.where(v >= 0, v, 0.2 * v)

    # Matched-precision reference (bf16 operands, f32 accumulation) — tight check.
    def ref_bf16(x, p):
        xb = x.astype(jnp.bfloat16)
        h = jnp.dot(xb, p["w1"].T.astype(jnp.bfloat16),
                    preferred_element_type=jnp.float32) + p["b1"]
        h = lrelu(h).astype(jnp.bfloat16)
        h = jnp.dot(h, p["w2"].T.astype(jnp.bfloat16),
                    preferred_element_type=jnp.float32) + p["b2"]
        h = lrelu(h).astype(jnp.bfloat16)
        return jnp.dot(h, p["w3"].T.astype(jnp.bfloat16),
                       preferred_element_type=jnp.float32) + p["b3"]

    # Pure f32 reference (same math as the PyTorch forward) — loose check.
    def ref_f32(x, p):
        h = lrelu(x @ p["w1"].T + p["b1"])
        h = lrelu(h @ p["w2"].T + p["b2"])
        return h @ p["w3"].T + p["b3"]

    # --- Test 1: small shapes, resident-weight path ------------------------
    B, RES_SIZE, NGH, ATT_SIZE = 8, 32, 64, 16
    key = jax.random.PRNGKey(0)
    k_feat, k_params = jax.random.split(key)
    feat = jax.random.normal(k_feat, (B, RES_SIZE), jnp.float32)
    params = init_dec_params(k_params, RES_SIZE, NGH, ATT_SIZE)

    prepared = prepare_dec_params(params)        # one-time transpose/pad/cast
    out = dec_forward(feat, prepared)
    jax.block_until_ready(out)
    assert out.shape == (B, ATT_SIZE)
    assert jnp.allclose(out, ref_bf16(feat, params), atol=1e-4, rtol=1e-4)
    assert jnp.allclose(out, ref_f32(feat, params), atol=5e-2, rtol=5e-2)

    # --- Test 2: forced K-tiled fallback (2 batch tiles x 2 ngh tiles) -----
    B2, RES2, NGH2, ATT2 = 40, 128, 256, 32
    k_feat2, k_params2 = jax.random.split(jax.random.PRNGKey(1))
    feat2 = jax.random.normal(k_feat2, (B2, RES2), jnp.float32)
    params2 = init_dec_params(k_params2, RES2, NGH2, ATT2)
    prepared2 = prepare_dec_params(params2)
    out2 = dec_forward(feat2, prepared2, force_k_tiled=True, k_tile=128)
    jax.block_until_ready(out2)
    assert out2.shape == (B2, ATT2)
    assert jnp.allclose(out2, ref_bf16(feat2, params2), atol=5e-4, rtol=5e-4)
    assert jnp.allclose(out2, ref_f32(feat2, params2), atol=5e-2, rtol=5e-2)

    print("KERNEL_OK")
</pallas_src>

<mosaic_0001>
module attributes {stable_mosaic.version = 11 : i64} {
  func.func @_dec_kernel_resident(%arg0: i32, %arg1: memref<16x128xf32, #tpu.memory_space<vmem>>, %arg2: memref<128x128xbf16, #tpu.memory_space<vmem>>, %arg3: memref<1x128xf32, #tpu.memory_space<vmem>>, %arg4: memref<128x128xbf16, #tpu.memory_space<vmem>>, %arg5: memref<1x128xf32, #tpu.memory_space<vmem>>, %arg6: memref<128x128xbf16, #tpu.memory_space<vmem>>, %arg7: memref<1x128xf32, #tpu.memory_space<vmem>>, %arg8: memref<16x128xf32, #tpu.memory_space<vmem>>) attributes {dimension_semantics = [#tpu.dimension_semantics<parallel>], iteration_bounds = array<i64: 1>, scalar_prefetch = 0 : i64, scratch_operands = 0 : i64, tpu.core_type = #tpu.core_type<tc>, window_params = [{transform_indices = @transform_0, window_bounds = array<i64: 16, 128>}, {pipeline_mode = #tpu.pipeline_mode<synchronous>, transform_indices = @transform_1, window_bounds = array<i64: 128, 128>}, {pipeline_mode = #tpu.pipeline_mode<synchronous>, transform_indices = @transform_2, window_bounds = array<i64: 1, 128>}, {pipeline_mode = #tpu.pipeline_mode<synchronous>, transform_indices = @transform_3, window_bounds = array<i64: 128, 128>}, {pipeline_mode = #tpu.pipeline_mode<synchronous>, transform_indices = @transform_4, window_bounds = array<i64: 1, 128>}, {pipeline_mode = #tpu.pipeline_mode<synchronous>, transform_indices = @transform_5, window_bounds = array<i64: 128, 128>}, {pipeline_mode = #tpu.pipeline_mode<synchronous>, transform_indices = @transform_6, window_bounds = array<i64: 1, 128>}, {transform_indices = @transform_7, window_bounds = array<i64: 16, 128>}]} {
    %c0 = arith.constant 0 : index
    %c0_0 = arith.constant 0 : index
    %0 = vector.load %arg1[%c0, %c0_0] : memref<16x128xf32, #tpu.memory_space<vmem>>, vector<16x128xf32>
    %1 = arith.truncf %0 : vector<16x128xf32> to vector<16x128xbf16>
    %c0_1 = arith.constant 0 : index
    %c0_2 = arith.constant 0 : index
    %2 = vector.load %arg2[%c0_1, %c0_2] : memref<128x128xbf16, #tpu.memory_space<vmem>>, vector<128x128xbf16>
    %cst = arith.constant dense<0.000000e+00> : vector<16x128xf32>
    %3 = tpu.matmul %1, %2, %cst {dimension_numbers = #tpu.dot_dimension_numbers<[1], [0], [0], [1], [0, 0, 1, 1], [], []>} : vector<16x128xbf16>, vector<128x128xbf16>, vector<16x128xf32> -> vector<16x128xf32>
    %c0_3 = arith.constant 0 : index
    %c0_4 = arith.constant 0 : index
    %4 = vector.load %arg3[%c0_3, %c0_4] : memref<1x128xf32, #tpu.memory_space<vmem>>, vector<1x128xf32>
    %5 = vector.broadcast %4 : vector<1x128xf32> to vector<16x128xf32>
    %6 = arith.addf %3, %5 : vector<16x128xf32>
    %cst_5 = arith.constant 0.000000e+00 : f32
    %7 = vector.broadcast %cst_5 : f32 to vector<16x128xf32>
    %8 = arith.cmpf oge, %6, %7 : vector<16x128xf32>
    %cst_6 = arith.constant 2.000000e-01 : f32
    %9 = vector.broadcast %cst_6 : f32 to vector<16x128xf32>
    %10 = arith.mulf %9, %6 : vector<16x128xf32>
    %11 = arith.select %8, %6, %10 : vector<16x128xi1>, vector<16x128xf32>
    %12 = arith.truncf %11 : vector<16x128xf32> to vector<16x128xbf16>
    %c0_7 = arith.constant 0 : index
    %c0_8 = arith.constant 0 : index
    %13 = vector.load %arg4[%c0_7, %c0_8] : memref<128x128xbf16, #tpu.memory_space<vmem>>, vector<128x128xbf16>
    %cst_9 = arith.constant dense<0.000000e+00> : vector<16x128xf32>
    %14 = tpu.matmul %12, %13, %cst_9 {dimension_numbers = #tpu.dot_dimension_numbers<[1], [0], [0], [1], [0, 0, 1, 1], [], []>} : vector<16x128xbf16>, vector<128x128xbf16>, vector<16x128xf32> -> vector<16x128xf32>
    %c0_10 = arith.constant 0 : index
    %c0_11 = arith.constant 0 : index
    %15 = vector.load %arg5[%c0_10, %c0_11] : memref<1x128xf32, #tpu.memory_space<vmem>>, vector<1x128xf32>
    %16 = vector.broadcast %15 : vector<1x128xf32> to vector<16x128xf32>
    %17 = arith.addf %14, %16 : vector<16x128xf32>
    %cst_12 = arith.constant 0.000000e+00 : f32
    %18 = vector.broadcast %cst_12 : f32 to vector<16x128xf32>
    %19 = arith.cmpf oge, %17, %18 : vector<16x128xf32>
    %cst_13 = arith.constant 2.000000e-01 : f32
    %20 = vector.broadcast %cst_13 : f32 to vector<16x128xf32>
    %21 = arith.mulf %20, %17 : vector<16x128xf32>
    %22 = arith.select %19, %17, %21 : vector<16x128xi1>, vector<16x128xf32>
    %23 = arith.truncf %22 : vector<16x128xf32> to vector<16x128xbf16>
    %c0_14 = arith.constant 0 : index
    %c0_15 = arith.constant 0 : index
    %24 = vector.load %arg6[%c0_14, %c0_15] : memref<128x128xbf16, #tpu.memory_space<vmem>>, vector<128x128xbf16>
    %cst_16 = arith.constant dense<0.000000e+00> : vector<16x128xf32>
    %25 = tpu.matmul %23, %24, %cst_16 {dimension_numbers = #tpu.dot_dimension_numbers<[1], [0], [0], [1], [0, 0, 1, 1], [], []>} : vector<16x128xbf16>, vector<128x128xbf16>, vector<16x128xf32> -> vector<16x128xf32>
    %c0_17 = arith.constant 0 : index
    %c0_18 = arith.constant 0 : index
    %26 = vector.load %arg7[%c0_17, %c0_18] : memref<1x128xf32, #tpu.memory_space<vmem>>, vector<1x128xf32>
    %27 = vector.broadcast %26 : vector<1x128xf32> to vector<16x128xf32>
    %28 = arith.addf %25, %27 : vector<16x128xf32>
    %c0_19 = arith.constant 0 : index
    %c0_20 = arith.constant 0 : index
    %29 = vector.load %arg8[%c0_19, %c0_20] : memref<16x128xf32, #tpu.memory_space<vmem>>, vector<16x128xf32>
    tpu.vector_store %arg8[%c0_19, %c0_20], %28 {strides = array<i32>} : memref<16x128xf32, #tpu.memory_space<vmem>>, vector<16x128xf32>,
    return
  }
  func.func @transform_0(%arg0: i32) -> (i32, i32) {
    %c0_i32 = arith.constant 0 : i32
    %c0_i32_0 = arith.constant 0 : i32
    return %arg0, %c0_i32 : i32, i32
  }
  func.func @transform_1(%arg0: i32) -> (i32, i32) {
    %c0_i32 = arith.constant 0 : i32
    %c0_i32_0 = arith.constant 0 : i32
    %c0_i32_1 = arith.constant 0 : i32
    return %c0_i32, %c0_i32_0 : i32, i32
  }
  func.func @transform_2(%arg0: i32) -> (i32, i32) {
    %c0_i32 = arith.constant 0 : i32
    %c0_i32_0 = arith.constant 0 : i32
    %c0_i32_1 = arith.constant 0 : i32
    return %c0_i32, %c0_i32_0 : i32, i32
  }
  func.func @transform_3(%arg0: i32) -> (i32, i32) {
    %c0_i32 = arith.constant 0 : i32
    %c0_i32_0 = arith.constant 0 : i32
    %c0_i32_1 = arith.constant 0 : i32
    return %c0_i32, %c0_i32_0 : i32, i32
  }
  func.func @transform_4(%arg0: i32) -> (i32, i32) {
    %c0_i32 = arith.constant 0 : i32
    %c0_i32_0 = arith.constant 0 : i32
    %c0_i32_1 = arith.constant 0 : i32
    return %c0_i32, %c0_i32_0 : i32, i32
  }
  func.func @transform_5(%arg0: i32) -> (i32, i32) {
    %c0_i32 = arith.constant 0 : i32
    %c0_i32_0 = arith.constant 0 : i32
    %c0_i32_1 = arith.constant 0 : i32
    return %c0_i32, %c0_i32_0 : i32, i32
  }
  func.func @transform_6(%arg0: i32) -> (i32, i32) {
    %c0_i32 = arith.constant 0 : i32
    %c0_i32_0 = arith.constant 0 : i32
    %c0_i32_1 = arith.constant 0 : i32
    return %c0_i32, %c0_i32_0 : i32, i32
  }
  func.func @transform_7(%arg0: i32) -> (i32, i32) {
    %c0_i32 = arith.constant 0 : i32
    %c0_i32_0 = arith.constant 0 : i32
    return %arg0, %c0_i32 : i32, i32
  }
}

</mosaic_0001>

<bundles_post_ra>
// kernel: tpu_custom_call.1
= control target key start
LH: loop header
LB: loop body
LE: loop exit
PB: predicated region body
PF: predicated region fallthrough
CT: control target
= control target key end

     0   :  { %12 = vsyncpa [#allocation3], 0  ;;  %s834_s0 = inlined_call_operand.hbm [shape: f32[16,128], index: 0, kind: input, shape index: {}]   ;;  %s835_s1 = inlined_call_operand.hbm [shape: bf16[128,128], index: 1, kind: input, shape index: {}]   ;;  %s836_s2 = inlined_call_operand.vmem [shape: f32[1,128], index: 2, kind: input, shape index: {}]   ;;  %s837_s3 = inlined_call_operand.hbm [shape: bf16[128,128], index: 3, kind: input, shape index: {}]   ;;  %s838_s4 = inlined_call_operand.vmem [shape: f32[1,128], index: 4, kind: input, shape index: {}]   ;;  %s839_s5 = inlined_call_operand.hbm [shape: bf16[128,128], index: 5, kind: input, shape index: {}]   ;;  %s840_s6 = inlined_call_operand.vmem [shape: f32[1,128], index: 6, kind: input, shape index: {}]   ;;  %s841_s7 = inlined_call_operand.hbm [shape: f32[16,128], index: 7, kind: output, shape index: {}]  }
   0x1   :  { %13 = vsyncpa [#allocation6], 0 }
   0x2   :  { %14 = vsyncpa [#allocation9], 0 }
   0x3   :  { %15 = vsyncpa [#allocation4], 0  ;;  %s714_s24 = smov [#allocation5]  }
   0x4   :  { %s33_s25 = sshll.u32 %s714_s24, 4  ;;  %s34_s25 = int_to_ptr.vmem [resolvable:$true] %s33_s25 }
   0x5   :  { %s614_s26 = scalar_lea.vmem %s34_s25, 1024  ;;  %p619_p1 = scmp.lt.s32.totalorder %s34_s25, %s34_s25 }
   0x6   :  { %p615_p0 = scmp.ne.s32.totalorder %s34_s25, %s614_s26  ;;  %p620_p2 = scmp.lt.s32.totalorder %s614_s26, %s614_s26 }
   0x8   :  { %p621_p3 = por %p620_p2, %p619_p1 }
   0xa   :  { %p622_p4 = pnand %p621_p3, %p615_p0 }
   0xc   :  { %625 = shalt.err (!%p622_p4)
}
   0xd   :  { %s715_s27 = smov 64   ;;  %s716_s28 = smov 4  }
   0xe   :  { %39 = dma.hbm_to_vmem [thread:$0]  %s835_s1, 1024, %s34_s25, [#allocation6], %s715_s27, %s715_s27, %s716_s28  }
   0xf   :  { %s717_s8 = smov [#allocation2]  }
  0x10   :  { %s21_s9 = sshll.u32 %s717_s8, 4  ;;  %s22_s9 = int_to_ptr.vmem [resolvable:$true] %s21_s9 }
  0x11   :  { %s634_s10 = scalar_lea.vmem %s22_s9, 256  ;;  %p639_p6 = scmp.lt.s32.totalorder %s22_s9, %s22_s9 }
  0x12   :  { %p635_p5 = scmp.ne.s32.totalorder %s22_s9, %s634_s10  ;;  %p640_p7 = scmp.lt.s32.totalorder %s634_s10, %s634_s10 }
  0x14   :  { %p641_p8 = por %p640_p7, %p639_p6 }
  0x16   :  { %p642_p9 = pnand %p641_p8, %p635_p5 }
  0x18   :  { %645 = shalt.err (!%p642_p9)
}
  0x19   :  { %s718_s11 = smov 128   ;;  %s719_s12 = smov 8  }
  0x1a   :  { %27 = dma.hbm_to_vmem [thread:$0]  %s834_s0, 256, %s22_s9, [#allocation3], %s718_s11, %s718_s11, %s719_s12  }
  0x1b   :  { %s720_s1 = smov [#allocation7]   ;;  %s721_s16 = smov [#allocation8]  }
  0x1c   :  { %s47_s15 = sshll.u32 %s720_s1, 4  ;;  %s61_s17 = sshll.u32 %s721_s16, 4  ;;  %s48_s15 = int_to_ptr.vmem [resolvable:$true] %s47_s15  ;;  %s62_s17 = int_to_ptr.vmem [resolvable:$true] %s61_s17 }
  0x1d   :  { %s654_s18 = scalar_lea.vmem %s48_s15, 1024  ;;  %p659_p11 = scmp.lt.s32.totalorder %s48_s15, %s48_s15 }
  0x1e   :  { %p655_p10 = scmp.ne.s32.totalorder %s48_s15, %s654_s18  ;;  %p660_p12 = scmp.lt.s32.totalorder %s654_s18, %s654_s18 }
  0x20   :  { %p661_p13 = por %p660_p12, %p659_p11 }
  0x22   :  { %p662_p0 = pnand %p661_p13, %p655_p10 }
  0x24   :  { %665 = shalt.err (!%p662_p0)
}
  0x25   :  { %53 = dma.hbm_to_vmem [thread:$0]  %s837_s3, 1024, %s48_s15, [#allocation6], %s715_s27, %s715_s27, %s716_s28  }
  0x26   :  { %s674_s0 = scalar_lea.vmem %s62_s17, 1024  ;;  %p679_p2 = scmp.lt.s32.totalorder %s62_s17, %s62_s17 }
  0x27   :  { %p675_p1 = scmp.ne.s32.totalorder %s62_s17, %s674_s0  ;;  %p680_p3 = scmp.lt.s32.totalorder %s674_s0, %s674_s0 }
  0x29   :  { %p681_p4 = por %p680_p3, %p679_p2 }
  0x2b   :  { %p682_p5 = pnand %p681_p4, %p675_p1 }
  0x2d   :  { %685 = shalt.err (!%p682_p5)
}
  0x2e   :  { %67 = dma.hbm_to_vmem [thread:$0]  %s839_s5, 1024, %s62_s17, [#allocation9], %s715_s27, %s715_s27, %s716_s28  }
  0x2f   :  { %706 = dma.done.wait [#allocation3], 256  }
  0x30   :  { %707 = vsyncadd [#allocation3], 4294967040 }
  0x31   :  { %708 = dma.done.wait [#allocation6], 2048  }
  0x32   :  { %709 = vsyncadd [#allocation6], 4294965248 }
  0x33   :  { %710 = dma.done.wait [#allocation9], 1024  }
  0x34   :  { %711 = vsyncadd [#allocation9], 4294966272  ;;  %v722_v0 = vmov 0.0   ;;  %vm723_vm0 = vmmov 0   ;;  %v582_v1 = vld [vmem:[#allocation5 + $0x38] sm:$0xff]   ;;  %v583_v2 = vld [vmem:[#allocation5 + $0x30] sm:$0xff]  }
  0x35   :  { %511 = vmatprep.subr.bf16.mxu0 %v722_v0  ;;  %527 = vmatprep.mubr.msk.bf16.mxu0 %vm723_vm0, %v722_v0  ;;  %v584_v3 = vld [vmem:[#allocation5 + $0x28] sm:$0xff]   ;;  %v590_v4 = vld [vmem:[#allocation7 + $0x38] sm:$0xff]   ;;  %v585_v5 = vld [vmem:[#allocation5 + $0x20] sm:$0xff]  }
  0x36   :  { %531 = vmatprep.subr.bf16.mxu1 %v722_v0  ;;  %547 = vmatprep.mubr.msk.bf16.mxu1 %vm723_vm0, %v722_v0  ;;  %v591_v6 = vld [vmem:[#allocation7 + $0x30] sm:$0xff]   ;;  %v586_v7 = vld [vmem:[#allocation5 + $0x18] sm:$0xff]   ;;  %v592_v8 = vld [vmem:[#allocation7 + $0x28] sm:$0xff]  }
  0x37   :  { %512 = vmatpush3.bf16.msra.mxu0 %v582_v1  ;;  %532 = vmatpush3.bf16.msra.mxu1 %v590_v4  ;;  %v587_v9 = vld [vmem:[#allocation5 + $0x10] sm:$0xff]   ;;  %v593_v10 = vld [vmem:[#allocation7 + $0x20] sm:$0xff]   ;;  %v588_v11 = vld [vmem:[#allocation5 + $0x8] sm:$0xff]  }
  0x38   :  { %513 = vmatprep.subr.bf16.mxu0 %v722_v0  ;;  %533 = vmatprep.subr.bf16.mxu1 %v722_v0  ;;  %v594_v12 = vld [vmem:[#allocation7 + $0x18] sm:$0xff]   ;;  %v589_v13 = vld [vmem:[#allocation5] sm:$0xff]   ;;  %v83_v14 = vld [vmem:[#allocation2] sm:$0xff] }
  0x39   :  { %v84_v15 = vld [vmem:[#allocation2 + $0x8] sm:$0xff]  ;;  %v595_v17 = vld [vmem:[#allocation7 + $0x10] sm:$0xff]   ;;  %v596_v18 = vld [vmem:[#allocation7 + $0x8] sm:$0xff]  }
  0x3a   :  { %v85_v16 = vpack.c.bf16 %v84_v15, %v83_v14  ;;  %v597_v19 = vld [vmem:[#allocation7] sm:$0xff]   ;;  %v598_v20 = vld [vmem:[#allocation8 + $0x38] sm:$0xff]   ;;  %v599_v21 = vld [vmem:[#allocation8 + $0x30] sm:$0xff]  }
  0x3b   :  { %514 = vmatpush3.bf16.msra.mxu0 %v583_v2  ;;  %534 = vmatpush3.bf16.msra.mxu1 %v591_v6  ;;  %v600_v22 = vld [vmem:[#allocation8 + $0x28] sm:$0xff]   ;;  %v601_v23 = vld [vmem:[#allocation8 + $0x20] sm:$0xff]   ;;  %v602_v24 = vld [vmem:[#allocation8 + $0x18] sm:$0xff]  }
  0x3c   :  { %515 = vmatprep.subr.bf16.mxu0 %v722_v0  ;;  %535 = vmatprep.subr.bf16.mxu1 %v722_v0  ;;  %v457_v25 = vld [vmem:[%s836_s2] ss:$0 sm:$0xff]  ;;  %v604_v38 = vld [vmem:[#allocation8 + $0x8] sm:$0xff]   ;;  %v605_v39 = vld [vmem:[#allocation8] sm:$0xff]  }
  0x3d   :  { %v603_v37 = vld [vmem:[#allocation8 + $0x10] sm:$0xff]  }
  0x3e   :  { %v466_v40 = vld [vmem:[%s838_s4] ss:$0 sm:$0xff]  ;;  %s724_s4 = smov [#allocation10]  }
  0x3f   :  { %516 = vmatpush3.bf16.msra.mxu0 %v584_v3  ;;  %536 = vmatpush3.bf16.msra.mxu1 %v592_v8  ;;  %v475_v52 = vld [vmem:[%s840_s6] ss:$0 sm:$0xff]  ;;  %s443_s26 = sshll.u32 %s724_s4, 4  ;;  %s444_s26 = int_to_ptr.vmem [resolvable:$true] %s443_s26 }
  0x40   :  { %517 = vmatprep.subr.bf16.mxu0 %v722_v0  ;;  %537 = vmatprep.subr.bf16.mxu1 %v722_v0  ;;  %s686_s27 = scalar_lea.vmem %s444_s26, 256  ;;  %p691_p7 = scmp.lt.s32.totalorder %s444_s26, %s444_s26 }
  0x41   :  { %p687_p6 = scmp.ne.s32.totalorder %s444_s26, %s686_s27  ;;  %p692_p8 = scmp.lt.s32.totalorder %s686_s27, %s686_s27 }
  0x43   :  { %518 = vmatpush3.bf16.msra.mxu0 %v585_v5  ;;  %538 = vmatpush3.bf16.msra.mxu1 %v593_v10  ;;  %p693_p9 = por %p692_p8, %p691_p7 }
  0x44   :  { %519 = vmatprep.subr.bf16.mxu0 %v722_v0  ;;  %539 = vmatprep.subr.bf16.mxu1 %v722_v0 }
  0x45   :  { %p694_p10 = pnand %p693_p9, %p687_p6 }
  0x47   :  { %520 = vmatpush3.bf16.msra.mxu0 %v586_v7  ;;  %540 = vmatpush3.bf16.msra.mxu1 %v594_v12 }
  0x48   :  { %521 = vmatprep.subr.bf16.mxu0 %v722_v0  ;;  %541 = vmatprep.subr.bf16.mxu1 %v722_v0 }
  0x4b   :  { %522 = vmatpush3.bf16.msra.mxu0 %v587_v9  ;;  %542 = vmatpush3.bf16.msra.mxu1 %v595_v17 }
  0x4c   :  { %523 = vmatprep.subr.bf16.mxu0 %v722_v0  ;;  %543 = vmatprep.subr.bf16.mxu1 %v722_v0 }
  0x4f   :  { %524 = vmatpush3.bf16.msra.mxu0 %v588_v11  ;;  %544 = vmatpush3.bf16.msra.mxu1 %v596_v18 }
  0x50   :  { %525 = vmatprep.subr.bf16.mxu0 %v722_v0  ;;  %545 = vmatprep.subr.bf16.mxu1 %v722_v0 }
  0x53   :  { %526 = vmatpush3.bf16.msra.mxu0 %v589_v13  ;;  %546 = vmatpush3.bf16.msra.mxu1 %v597_v19 }
  0x54   :  { %551 = vmatprep.subr.bf16.mxu0 %v722_v0 }
  0x56   :  { %528 = vmatmul.mubr.bf16.vlgmr.msra.gmra.mxu0 %v85_v16 }
  0x57   :  { %567 = vmatprep.mubr.msk.bf16.mxu0 %vm723_vm0, %v722_v0  ;;  %552 = vmatpush3.bf16.msra.mxu0 %v598_v20 }
  0x58   :  { %553 = vmatprep.subr.bf16.mxu0 %v722_v0 }
  0x5b   :  { %554 = vmatpush3.bf16.msra.mxu0 %v599_v21 }
  0x5c   :  { %555 = vmatprep.subr.bf16.mxu0 %v722_v0 }
  0x5f   :  { %556 = vmatpush3.bf16.msra.mxu0 %v600_v22 }
  0x60   :  { %557 = vmatprep.subr.bf16.mxu0 %v722_v0 }
  0x63   :  { %558 = vmatpush3.bf16.msra.mxu0 %v601_v23 }
  0x64   :  { %559 = vmatprep.subr.bf16.mxu0 %v722_v0 }
  0x67   :  { %560 = vmatpush3.bf16.msra.mxu0 %v602_v24 }
  0x68   :  { %561 = vmatprep.subr.bf16.mxu0 %v722_v0 }
  0x6b   :  { %562 = vmatpush3.bf16.msra.mxu0 %v603_v37 }
  0x6c   :  { %563 = vmatprep.subr.bf16.mxu0 %v722_v0 }
  0x6f   :  { %564 = vmatpush3.bf16.msra.mxu0 %v604_v38 }
  0x70   :  { %565 = vmatprep.subr.bf16.mxu0 %v722_v0 }
  0x73   :  { %566 = vmatpush3.bf16.msra.mxu0 %v605_v39 }
 0x116   :  { %v191_v26 = vpop.f32.mrf.mxu0 }
 0x117   :  { %v192_v27 = vadd.f32 %v457_v25, %v191_v26 }
 0x118   :  { %v529_v28 = vpop.f32.mrf.mxu0 }
 0x119   :  { %v200_v30 = vmul.f32 0.2, %v192_v27  ;;  %vm198_vm1 = vcmp.ge.f32.partialorder %v192_v27, 0.0 }
 0x11a   :  { %v194_v29 = vpop.f32.mrf.mxu0 }
 0x11b   :  { %v195_v31 = vadd.f32 %v457_v25, %v194_v29  ;;  %v202_v34 = vsel %vm198_vm1, %v192_v27, %v200_v30 }
 0x11c   :  { %v530_v32 = vpop.f32.mrf.mxu0 }
 0x11d   :  { %vm199_vm2 = vcmp.ge.f32.partialorder %v195_v31, 0.0  ;;  %v201_v33 = vmul.f32 0.2, %v195_v31 }
 0x11f   :  { %v203_v35 = vsel %vm199_vm2, %v195_v31, %v201_v33 }
 0x120   :  { %v204_v36 = vpack.c.bf16 %v203_v35, %v202_v34 }
 0x122   :  { %548 = vmatmul.mubr.bf16.vlgmr.msra.gmra.mxu1 %v204_v36 }
 0x1e2   :  { %v310_v41 = vpop.f32.mrf.mxu1 }
 0x1e3   :  { %v311_v42 = vadd.f32 %v466_v40, %v310_v41 }
 0x1e4   :  { %v549_v43 = vpop.f32.mrf.mxu1 }
 0x1e5   :  { %v319_v45 = vmul.f32 0.2, %v311_v42  ;;  %vm317_vm3 = vcmp.ge.f32.partialorder %v311_v42, 0.0 }
 0x1e6   :  { %v313_v44 = vpop.f32.mrf.mxu1 }
 0x1e7   :  { %v314_v46 = vadd.f32 %v466_v40, %v313_v44  ;;  %v321_v49 = vsel %vm317_vm3, %v311_v42, %v319_v45 }
 0x1e8   :  { %v550_v47 = vpop.f32.mrf.mxu1 }
 0x1e9   :  { %vm318_vm4 = vcmp.ge.f32.partialorder %v314_v46, 0.0  ;;  %v320_v48 = vmul.f32 0.2, %v314_v46 }
 0x1eb   :  { %v322_v50 = vsel %vm318_vm4, %v314_v46, %v320_v48 }
 0x1ec   :  { %v323_v51 = vpack.c.bf16 %v322_v50, %v321_v49 }
 0x1ee   :  { %568 = vmatmul.mubr.bf16.vlgmr.msra.gmra.mxu0 %v323_v51 }
 0x2ae   :  { %v429_v53 = vpop.f32.mrf.mxu0 }
 0x2af   :  { %v430_v54 = vadd.f32 %v475_v52, %v429_v53 }
 0x2b0   :  { %v569_v55 = vpop.f32.mrf.mxu0 }
 0x2b1   :  { %436 = vst [vmem:[#allocation10] sm:$0xff] %v430_v54 }
 0x2b2   :  { %v432_v56 = vpop.f32.mrf.mxu0 }
 0x2b3   :  { %v433_v57 = vadd.f32 %v475_v52, %v432_v56 }
 0x2b4   :  { %v570_v58 = vpop.f32.mrf.mxu0 }
 0x2b5   :  { %437 = vst [vmem:[#allocation10 + $0x8] sm:$0xff] %v433_v57 }
 0x2b6   :  { %697 = shalt.err (!%p694_p10)
}
 0x2b7   :  { %449 = dma.vmem_to_hbm [thread:$0]  %s444_s26, 256, %s841_s7, [#allocation4], %s718_s11, %s718_s11, %s719_s12  }
 0x2b8   :  { %712 = dma.done.wait [#allocation4], 256  }
 0x2b9   :  { %713 = vsyncadd [#allocation4], 4294967040 }
 0x2ba   :  { %453 = vsyncpa [#allocation3], 1 }
 0x2bb   :  { %454 = vsyncpa [#allocation6], 1 }
 0x2bc   :  { %455 = vsyncpa [#allocation9], 1 }
 0x2bd   :  { %456 = vsyncpa [#allocation4], 1 }

</bundles_post_ra>
